<compile_context>
chip_gen: v7x
topology: tpu7x:2x2x1
jax: 0.10.0
libtpu: 0.0.40
codegen_flags: <defaults>
</compile_context>

<pallas_src>
import functools

import jax
import jax.numpy as jnp
from jax.experimental import pallas as pl
from jax.experimental.pallas import tpu as pltpu


_IN_FEATURES = 784
_K_PAD = 896  # 784 rounded up to a multiple of 128 lanes


def _round_up(x, m):
    return (x + m - 1) // m * m


def _mlp_kernel(x_ref,
                w1_ref, b1_ref,
                w2_ref, b2_ref,
                w3_ref, b3_ref,
                w4_ref, b4_ref,
                o_ref):
    # bf16 MXU operands, f32 accumulation; biases are f32.
    x = x_ref[...]                                                       # (bb, 896) bf16

    h = jnp.dot(x, w1_ref[...], preferred_element_type=jnp.float32) + b1_ref[...]
    h = jnp.maximum(h, 0.0).astype(jnp.bfloat16)

    h = jnp.dot(h, w2_ref[...], preferred_element_type=jnp.float32) + b2_ref[...]
    h = jnp.maximum(h, 0.0).astype(jnp.bfloat16)

    h = jnp.dot(h, w3_ref[...], preferred_element_type=jnp.float32) + b3_ref[...]
    h = jnp.maximum(h, 0.0).astype(jnp.bfloat16)

    logits = jnp.dot(h, w4_ref[...], preferred_element_type=jnp.float32) + b4_ref[...]

    # log_softmax along the class axis, kept in f32 inside the kernel
    # (exp/log on the EUP, 10-wide reduce on the XLU: off the MXU critical path).
    m = jnp.max(logits, axis=-1, keepdims=True)
    shifted = logits - m
    lse = jnp.log(jnp.sum(jnp.exp(shifted), axis=-1, keepdims=True))
    o_ref[...] = (shifted - lse).astype(o_ref.dtype)


@functools.partial(jax.jit, static_argnames=("block_b",))
def classifier_forward(x, params, block_b=512):
    """x: (B, 1, 28, 28) float32 (NCHW). Returns (B, 10) log-probabilities."""
    b = x.shape[0]
    x2d = x.reshape(b, -1).astype(jnp.float32)  # == torch x.view(B, -1) -> (B, 784)
    assert x2d.shape[1] == _IN_FEATURES, "Classifier expects 784 input features"

    (w1, b1), (w2, b2), (w3, b3), (w4, b4) = params

    # Batch tile: as large as block_b allows, never larger than the
    # sublane-rounded batch; pad the batch so the grid divides exactly.
    bb = _round_up(min(block_b, _round_up(b, 8)), 8)
    bp = _round_up(b, bb)
    grid = (bp // bb,)

    # Zero-pad: batch rows (sliced off at the end) and fc1 K (784 -> 896,
    # exact same result since pads are zeros).  Matmul operands go to bf16.
    xk = jnp.pad(x2d, ((0, bp - b), (0, _K_PAD - _IN_FEATURES))).astype(jnp.bfloat16)
    w1p = jnp.pad(w1, ((0, _K_PAD - _IN_FEATURES), (0, 0))).astype(jnp.bfloat16)
    w2b = w2.astype(jnp.bfloat16)
    w3b = w3.astype(jnp.bfloat16)
    w4b = w4.astype(jnp.bfloat16)
    b1f = b1.astype(jnp.float32)
    b2f = b2.astype(jnp.float32)
    b3f = b3.astype(jnp.float32)
    b4f = b4.astype(jnp.float32)

    def batch_spec(feat):
        return pl.BlockSpec((bb, feat), lambda i: (i, 0))

    def full_spec(arr):
        return pl.BlockSpec(arr.shape, lambda i: (0, 0))

    out = pl.pallas_call(
        _mlp_kernel,
        out_shape=jax.ShapeDtypeStruct((bp, 10), jnp.float32),
        grid_spec=pltpu.PrefetchScalarGridSpec(
            num_scalar_prefetch=0,
            grid=grid,
            in_specs=[
                batch_spec(_K_PAD),
                full_spec(w1p), full_spec(b1f),
                full_spec(w2b), full_spec(b2f),
                full_spec(w3b), full_spec(b3f),
                full_spec(w4b), full_spec(b4f),
            ],
            out_specs=batch_spec(10),
        ),
        compiler_params=pltpu.CompilerParams(
            dimension_semantics=("parallel",),
        ),
    )(xk, w1p, b1f, w2b, b2f, w3b, b3f, w4b, b4f)

    return out[:b]


def init_params(key):
    """Deterministic init mimicking torch.nn.Linear defaults (U[-1/sqrt(in), 1/sqrt(in)]).

    Weights stored as (in_features, out_features); biases as (1, out_features).
    """
    dims = [(784, 256), (256, 128), (128, 64), (64, 10)]
    params = []
    for (fan_in, fan_out) in dims:
        key, kw, kb = jax.random.split(key, 3)
        bound = 1.0 / jnp.sqrt(jnp.float32(fan_in))
        w = jax.random.uniform(kw, (fan_in, fan_out), jnp.float32, -bound, bound)
        bvec = jax.random.uniform(kb, (1, fan_out), jnp.float32, -bound, bound)
        params.append((w, bvec))
    return params


def _reference_forward(x, params):
    """Pure-JAX f32 reference of the PyTorch forward."""
    h = x.reshape(x.shape[0], -1)
    for i, (w, b) in enumerate(params):
        h = h @ w + b
        if i < 3:
            h = jnp.maximum(h, 0.0)
    return jax.nn.log_softmax(h, axis=1)


if __name__ == "__main__":
    key = jax.random.PRNGKey(0)
    kx, kp = jax.random.split(key)

    batch = 8
    x = jax.random.normal(kx, (batch, 1, 28, 28), jnp.float32)  # NCHW
    params = init_params(kp)

    out = classifier_forward(x, params)
    out = jax.block_until_ready(out)

    # sanity: shape, rows sum to 1 in prob space, and close to the f32 reference
    assert out.shape == (batch, 10)
    row_sums = jnp.sum(jnp.exp(out), axis=1)
    assert bool(jnp.all(jnp.abs(row_sums - 1.0) < 1e-4))
    ref = _reference_forward(x, params)
    assert bool(jnp.max(jnp.abs(out - ref)) < 1e-1)  # bf16-matmul tolerance

    print("KERNEL_OK")
</pallas_src>

<mosaic_0001>
module attributes {stable_mosaic.version = 11 : i64} {
  func.func @_mlp_kernel(%arg0: i32, %arg1: memref<8x896xbf16, #tpu.memory_space<vmem>>, %arg2: memref<896x256xbf16, #tpu.memory_space<vmem>>, %arg3: memref<1x256xf32, #tpu.memory_space<vmem>>, %arg4: memref<256x128xbf16, #tpu.memory_space<vmem>>, %arg5: memref<1x128xf32, #tpu.memory_space<vmem>>, %arg6: memref<128x64xbf16, #tpu.memory_space<vmem>>, %arg7: memref<1x64xf32, #tpu.memory_space<vmem>>, %arg8: memref<64x10xbf16, #tpu.memory_space<vmem>>, %arg9: memref<1x10xf32, #tpu.memory_space<vmem>>, %arg10: memref<8x10xf32, #tpu.memory_space<vmem>>) attributes {dimension_semantics = [#tpu.dimension_semantics<parallel>], iteration_bounds = array<i64: 1>, scalar_prefetch = 0 : i64, scratch_operands = 0 : i64, tpu.core_type = #tpu.core_type<tc>, window_params = [{transform_indices = @transform_0, window_bounds = array<i64: 8, 896>}, {pipeline_mode = #tpu.pipeline_mode<synchronous>, transform_indices = @transform_1, window_bounds = array<i64: 896, 256>}, {pipeline_mode = #tpu.pipeline_mode<synchronous>, transform_indices = @transform_2, window_bounds = array<i64: 1, 256>}, {pipeline_mode = #tpu.pipeline_mode<synchronous>, transform_indices = @transform_3, window_bounds = array<i64: 256, 128>}, {pipeline_mode = #tpu.pipeline_mode<synchronous>, transform_indices = @transform_4, window_bounds = array<i64: 1, 128>}, {pipeline_mode = #tpu.pipeline_mode<synchronous>, transform_indices = @transform_5, window_bounds = array<i64: 128, 64>}, {pipeline_mode = #tpu.pipeline_mode<synchronous>, transform_indices = @transform_6, window_bounds = array<i64: 1, 64>}, {pipeline_mode = #tpu.pipeline_mode<synchronous>, transform_indices = @transform_7, window_bounds = array<i64: 64, 10>}, {pipeline_mode = #tpu.pipeline_mode<synchronous>, transform_indices = @transform_8, window_bounds = array<i64: 1, 10>}, {transform_indices = @transform_9, window_bounds = array<i64: 8, 10>}]} {
    %c0 = arith.constant 0 : index
    %c0_0 = arith.constant 0 : index
    %0 = vector.load %arg1[%c0, %c0_0] : memref<8x896xbf16, #tpu.memory_space<vmem>>, vector<8x896xbf16>
    %c0_1 = arith.constant 0 : index
    %c0_2 = arith.constant 0 : index
    %1 = vector.load %arg2[%c0_1, %c0_2] : memref<896x256xbf16, #tpu.memory_space<vmem>>, vector<896x256xbf16>
    %cst = arith.constant dense<0.000000e+00> : vector<8x256xf32>
    %2 = tpu.matmul %0, %1, %cst {dimension_numbers = #tpu.dot_dimension_numbers<[1], [0], [0], [1], [0, 0, 1, 1], [], []>} : vector<8x896xbf16>, vector<896x256xbf16>, vector<8x256xf32> -> vector<8x256xf32>
    %c0_3 = arith.constant 0 : index
    %c0_4 = arith.constant 0 : index
    %3 = vector.load %arg3[%c0_3, %c0_4] : memref<1x256xf32, #tpu.memory_space<vmem>>, vector<1x256xf32>
    %4 = vector.broadcast %3 : vector<1x256xf32> to vector<8x256xf32>
    %5 = arith.addf %2, %4 : vector<8x256xf32>
    %cst_5 = arith.constant 0.000000e+00 : f32
    %6 = vector.broadcast %cst_5 : f32 to vector<8x256xf32>
    %7 = arith.maximumf %5, %6 : vector<8x256xf32>
    %8 = arith.truncf %7 : vector<8x256xf32> to vector<8x256xbf16>
    %c0_6 = arith.constant 0 : index
    %c0_7 = arith.constant 0 : index
    %9 = vector.load %arg4[%c0_6, %c0_7] : memref<256x128xbf16, #tpu.memory_space<vmem>>, vector<256x128xbf16>
    %cst_8 = arith.constant dense<0.000000e+00> : vector<8x128xf32>
    %10 = tpu.matmul %8, %9, %cst_8 {dimension_numbers = #tpu.dot_dimension_numbers<[1], [0], [0], [1], [0, 0, 1, 1], [], []>} : vector<8x256xbf16>, vector<256x128xbf16>, vector<8x128xf32> -> vector<8x128xf32>
    %c0_9 = arith.constant 0 : index
    %c0_10 = arith.constant 0 : index
    %11 = vector.load %arg5[%c0_9, %c0_10] : memref<1x128xf32, #tpu.memory_space<vmem>>, vector<1x128xf32>
    %12 = vector.broadcast %11 : vector<1x128xf32> to vector<8x128xf32>
    %13 = arith.addf %10, %12 : vector<8x128xf32>
    %cst_11 = arith.constant 0.000000e+00 : f32
    %14 = vector.broadcast %cst_11 : f32 to vector<8x128xf32>
    %15 = arith.maximumf %13, %14 : vector<8x128xf32>
    %16 = arith.truncf %15 : vector<8x128xf32> to vector<8x128xbf16>
    %c0_12 = arith.constant 0 : index
    %c0_13 = arith.constant 0 : index
    %17 = vector.load %arg6[%c0_12, %c0_13] : memref<128x64xbf16, #tpu.memory_space<vmem>>, vector<128x64xbf16>
    %cst_14 = arith.constant dense<0.000000e+00> : vector<8x64xf32>
    %18 = tpu.matmul %16, %17, %cst_14 {dimension_numbers = #tpu.dot_dimension_numbers<[1], [0], [0], [1], [0, 0, 1, 1], [], []>} : vector<8x128xbf16>, vector<128x64xbf16>, vector<8x64xf32> -> vector<8x64xf32>
    %c0_15 = arith.constant 0 : index
    %c0_16 = arith.constant 0 : index
    %19 = vector.load %arg7[%c0_15, %c0_16] : memref<1x64xf32, #tpu.memory_space<vmem>>, vector<1x64xf32>
    %20 = vector.broadcast %19 : vector<1x64xf32> to vector<8x64xf32>
    %21 = arith.addf %18, %20 : vector<8x64xf32>
    %cst_17 = arith.constant 0.000000e+00 : f32
    %22 = vector.broadcast %cst_17 : f32 to vector<8x64xf32>
    %23 = arith.maximumf %21, %22 : vector<8x64xf32>
    %24 = arith.truncf %23 : vector<8x64xf32> to vector<8x64xbf16>
    %c0_18 = arith.constant 0 : index
    %c0_19 = arith.constant 0 : index
    %25 = vector.load %arg8[%c0_18, %c0_19] : memref<64x10xbf16, #tpu.memory_space<vmem>>, vector<64x10xbf16>
    %cst_20 = arith.constant dense<0.000000e+00> : vector<8x10xf32>
    %26 = tpu.matmul %24, %25, %cst_20 {dimension_numbers = #tpu.dot_dimension_numbers<[1], [0], [0], [1], [0, 0, 1, 1], [], []>} : vector<8x64xbf16>, vector<64x10xbf16>, vector<8x10xf32> -> vector<8x10xf32>
    %c0_21 = arith.constant 0 : index
    %c0_22 = arith.constant 0 : index
    %27 = vector.load %arg9[%c0_21, %c0_22] : memref<1x10xf32, #tpu.memory_space<vmem>>, vector<1x10xf32>
    %28 = vector.broadcast %27 : vector<1x10xf32> to vector<8x10xf32>
    %29 = arith.addf %26, %28 : vector<8x10xf32>
    %cst_23 = arith.constant dense<0xFF800000> : vector<8xf32>
    %30 = vector.multi_reduction <maximumf>, %29, %cst_23 [1] : vector<8x10xf32> to vector<8xf32>
    %31 = vector.shape_cast %30 : vector<8xf32> to vector<8x1xf32>
    %32 = vector.broadcast %31 : vector<8x1xf32> to vector<8x10xf32>
    %33 = arith.subf %29, %32 : vector<8x10xf32>
    %34 = math.exp %33 : vector<8x10xf32>
    %cst_24 = arith.constant dense<0.000000e+00> : vector<8xf32>
    %35 = vector.multi_reduction <add>, %34, %cst_24 [1] : vector<8x10xf32> to vector<8xf32>
    %36 = vector.shape_cast %35 : vector<8xf32> to vector<8x1xf32>
    %37 = math.log %36 : vector<8x1xf32>
    %38 = vector.broadcast %37 : vector<8x1xf32> to vector<8x10xf32>
    %39 = arith.subf %33, %38 : vector<8x10xf32>
    %c0_25 = arith.constant 0 : index
    %c0_26 = arith.constant 0 : index
    %40 = vector.load %arg10[%c0_25, %c0_26] : memref<8x10xf32, #tpu.memory_space<vmem>>, vector<8x10xf32>
    tpu.vector_store %arg10[%c0_25, %c0_26], %39 {strides = array<i32>} : memref<8x10xf32, #tpu.memory_space<vmem>>, vector<8x10xf32>,
    return
  }
  func.func @transform_0(%arg0: i32) -> (i32, i32) {
    %c0_i32 = arith.constant 0 : i32
    %c0_i32_0 = arith.constant 0 : i32
    return %arg0, %c0_i32 : i32, i32
  }
  func.func @transform_1(%arg0: i32) -> (i32, i32) {
    %c0_i32 = arith.constant 0 : i32
    %c0_i32_0 = arith.constant 0 : i32
    %c0_i32_1 = arith.constant 0 : i32
    return %c0_i32, %c0_i32_0 : i32, i32
  }
  func.func @transform_2(%arg0: i32) -> (i32, i32) {
    %c0_i32 = arith.constant 0 : i32
    %c0_i32_0 = arith.constant 0 : i32
    %c0_i32_1 = arith.constant 0 : i32
    return %c0_i32, %c0_i32_0 : i32, i32
  }
  func.func @transform_3(%arg0: i32) -> (i32, i32) {
    %c0_i32 = arith.constant 0 : i32
    %c0_i32_0 = arith.constant 0 : i32
    %c0_i32_1 = arith.constant 0 : i32
    return %c0_i32, %c0_i32_0 : i32, i32
  }
  func.func @transform_4(%arg0: i32) -> (i32, i32) {
    %c0_i32 = arith.constant 0 : i32
    %c0_i32_0 = arith.constant 0 : i32
    %c0_i32_1 = arith.constant 0 : i32
    return %c0_i32, %c0_i32_0 : i32, i32
  }
  func.func @transform_5(%arg0: i32) -> (i32, i32) {
    %c0_i32 = arith.constant 0 : i32
    %c0_i32_0 = arith.constant 0 : i32
    %c0_i32_1 = arith.constant 0 : i32
    return %c0_i32, %c0_i32_0 : i32, i32
  }
  func.func @transform_6(%arg0: i32) -> (i32, i32) {
    %c0_i32 = arith.constant 0 : i32
    %c0_i32_0 = arith.constant 0 : i32
    %c0_i32_1 = arith.constant 0 : i32
    return %c0_i32, %c0_i32_0 : i32, i32
  }
  func.func @transform_7(%arg0: i32) -> (i32, i32) {
    %c0_i32 = arith.constant 0 : i32
    %c0_i32_0 = arith.constant 0 : i32
    %c0_i32_1 = arith.constant 0 : i32
    return %c0_i32, %c0_i32_0 : i32, i32
  }
  func.func @transform_8(%arg0: i32) -> (i32, i32) {
    %c0_i32 = arith.constant 0 : i32
    %c0_i32_0 = arith.constant 0 : i32
    %c0_i32_1 = arith.constant 0 : i32
    return %c0_i32, %c0_i32_0 : i32, i32
  }
  func.func @transform_9(%arg0: i32) -> (i32, i32) {
    %c0_i32 = arith.constant 0 : i32
    %c0_i32_0 = arith.constant 0 : i32
    return %arg0, %c0_i32 : i32, i32
  }
}

</mosaic_0001>

<bundles_post_ra>
// kernel: classifier_forward.1
= control target key start
LH: loop header
LB: loop body
LE: loop exit
PB: predicated region body
PF: predicated region fallthrough
CT: control target
= control target key end

     0   :  { %s2321_s0 = inlined_call_operand.vmem [shape: bf16[8,896], index: 0, kind: input, shape index: {}]   ;;  %s2322_s1 = inlined_call_operand.vmem [shape: bf16[896,256], index: 1, kind: input, shape index: {}]   ;;  %s2323_s2 = inlined_call_operand.vmem [shape: f32[1,256], index: 2, kind: input, shape index: {}]   ;;  %s2324_s3 = inlined_call_operand.vmem [shape: bf16[256,128], index: 3, kind: input, shape index: {}]   ;;  %s2325_s4 = inlined_call_operand.vmem [shape: f32[1,128], index: 4, kind: input, shape index: {}]   ;;  %s2326_s5 = inlined_call_operand.vmem [shape: bf16[128,64], index: 5, kind: input, shape index: {}]   ;;  %s2327_s6 = inlined_call_operand.vmem [shape: f32[1,64], index: 6, kind: input, shape index: {}]   ;;  %s2328_s7 = inlined_call_operand.vmem [shape: bf16[64,10], index: 7, kind: input, shape index: {}]   ;;  %s2329_s8 = inlined_call_operand.vmem [shape: f32[1,10], index: 8, kind: input, shape index: {}]   ;;  %s2330_s9 = inlined_call_operand.hbm [shape: f32[8,10], index: 9, kind: output, shape index: {}]  }
   0x1   :  { %v1551_v0 = vld [vmem:[%s2322_s1 + $0x104] ss:$8 sps:$4 sm:$0xff]   ;;  %v1553_v1 = vld [vmem:[%s2322_s1 + $0x100] ss:$8 sps:$4 sm:$0xff]   ;;  %v1554_v2 = vld [vmem:[%s2322_s1 + $0x114] ss:$8 sps:$4 sm:$0xff]  }
   0x2   :  { %788 = vmatprep.subr.bf16.mxu0 %v1551_v0  ;;  %v1556_v3 = vld [vmem:[%s2322_s1 + $0x110] ss:$8 sps:$4 sm:$0xff]   ;;  %v1557_v4 = vld [vmem:[%s2322_s1 + $0x124] ss:$8 sps:$4 sm:$0xff]   ;;  %v1559_v5 = vld [vmem:[%s2322_s1 + $0x120] ss:$8 sps:$4 sm:$0xff]  }
   0x3   :  { %789 = vmatpush1.bf16.msra.mxu0 %v1553_v1  ;;  %v1560_v6 = vld [vmem:[%s2322_s1 + $0x134] ss:$8 sps:$4 sm:$0xff]   ;;  %v1562_v7 = vld [vmem:[%s2322_s1 + $0x130] ss:$8 sps:$4 sm:$0xff]   ;;  %v1563_v8 = vld [vmem:[%s2322_s1 + $0x144] ss:$8 sps:$4 sm:$0xff]  }
   0x4   :  { %790 = vmatprep.subr.bf16.mxu0 %v1554_v2  ;;  %v1565_v9 = vld [vmem:[%s2322_s1 + $0x140] ss:$8 sps:$4 sm:$0xff]   ;;  %v1566_v10 = vld [vmem:[%s2322_s1 + $0x154] ss:$8 sps:$4 sm:$0xff]   ;;  %v1568_v11 = vld [vmem:[%s2322_s1 + $0x150] ss:$8 sps:$4 sm:$0xff]  }
   0x5   :  { %v1569_v12 = vld [vmem:[%s2322_s1 + $0x164] ss:$8 sps:$4 sm:$0xff]   ;;  %v1571_v15 = vld [vmem:[%s2322_s1 + $0x160] ss:$8 sps:$4 sm:$0xff]   ;;  %v1572_v16 = vld [vmem:[%s2322_s1 + $0x174] ss:$8 sps:$4 sm:$0xff]  }
   0x6   :  { %v1878_v13 = vld [vmem:[%s2321_s0 + $0x8] sm:$0xff]  ;;  %v1574_v17 = vld [vmem:[%s2322_s1 + $0x170] ss:$8 sps:$4 sm:$0xff]   ;;  %v1578_v20 = vld [vmem:[%s2322_s1 + $0x194] ss:$8 sps:$4 sm:$0xff]  }
   0x7   :  { %791 = vmatpush1.bf16.msra.mxu0 %v1556_v3  ;;  %v1319_v14 = vcombine.high %v1878_v13, %v1878_v13  ;;  %v1575_v18 = vld [vmem:[%s2322_s1 + $0x184] ss:$8 sps:$4 sm:$0xff]   ;;  %v1577_v19 = vld [vmem:[%s2322_s1 + $0x180] ss:$8 sps:$4 sm:$0xff]   ;;  %v1628_v23 = vld [vmem:[%s2322_s1 + $0x14] ss:$8 sps:$4 sm:$0xff]   ;;  %v1318_v54 = vcombine.low %v1878_v13, %v1878_v13 }
   0x8   :  { %792 = vmatprep.subr.bf16.mxu0 %v1557_v4  ;;  %v1622_v21 = vld [vmem:[%s2322_s1 + $0x4] ss:$8 sps:$4 sm:$0xff]   ;;  %v1624_v22 = vld [vmem:[%s2322_s1] ss:$8 sps:$4 sm:$0xff]   ;;  %v1630_v24 = vld [vmem:[%s2322_s1 + $0x10] ss:$8 sps:$4 sm:$0xff]  }
   0x9   :  { %820 = vmatprep.mubr.bf16.mxu0 %v1319_v14  ;;  %747 = vmatprep.subr.bf16.mxu1 %v1622_v21  ;;  %v1580_v25 = vld [vmem:[%s2322_s1 + $0x190] ss:$8 sps:$4 sm:$0xff]   ;;  %v1581_v26 = vld [vmem:[%s2322_s1 + $0x1a4] ss:$8 sps:$4 sm:$0xff]   ;;  %v1583_v28 = vld [vmem:[%s2322_s1 + $0x1a0] ss:$8 sps:$4 sm:$0xff]  }
   0xa   :  { %748 = vmatpush1.bf16.msra.mxu1 %v1624_v22  ;;  %v1634_v27 = vld [vmem:[%s2322_s1 + $0x24] ss:$8 sps:$4 sm:$0xff]   ;;  %v1636_v29 = vld [vmem:[%s2322_s1 + $0x20] ss:$8 sps:$4 sm:$0xff]   ;;  %v1640_v30 = vld [vmem:[%s2322_s1 + $0x34] ss:$8 sps:$4 sm:$0xff]  }
   0xb   :  { %793 = vmatpush1.bf16.msra.mxu0 %v1559_v5  ;;  %749 = vmatprep.subr.bf16.mxu1 %v1628_v23  ;;  %v1584_v31 = vld [vmem:[%s2322_s1 + $0x1b4] ss:$8 sps:$4 sm:$0xff]   ;;  %v1586_v32 = vld [vmem:[%s2322_s1 + $0x1b0] ss:$8 sps:$4 sm:$0xff]   ;;  %v1646_v34 = vld [vmem:[%s2322_s1 + $0x44] ss:$8 sps:$4 sm:$0xff]  }
   0xc   :  { %794 = vmatprep.subr.bf16.mxu0 %v1560_v6  ;;  %v1642_v33 = vld [vmem:[%s2322_s1 + $0x30] ss:$8 sps:$4 sm:$0xff]   ;;  %v1587_v35 = vld [vmem:[%s2322_s1 + $0x1c4] ss:$8 sps:$4 sm:$0xff]   ;;  %v1589_v36 = vld [vmem:[%s2322_s1 + $0x1c0] ss:$8 sps:$4 sm:$0xff]  }
   0xd   :  { %v1648_v37 = vld [vmem:[%s2322_s1 + $0x40] ss:$8 sps:$4 sm:$0xff]   ;;  %v1652_v38 = vld [vmem:[%s2322_s1 + $0x54] ss:$8 sps:$4 sm:$0xff]   ;;  %v1592_v40 = vld [vmem:[%s2322_s1 + $0x1d0] ss:$8 sps:$4 sm:$0xff]  }
   0xe   :  { %750 = vmatpush1.bf16.msra.mxu1 %v1630_v24  ;;  %v1590_v39 = vld [vmem:[%s2322_s1 + $0x1d4] ss:$8 sps:$4 sm:$0xff]   ;;  %v1654_v41 = vld [vmem:[%s2322_s1 + $0x50] ss:$8 sps:$4 sm:$0xff]   ;;  %v1658_v42 = vld [vmem:[%s2322_s1 + $0x64] ss:$8 sps:$4 sm:$0xff]  }
   0xf   :  { %795 = vmatpush1.bf16.msra.mxu0 %v1562_v7  ;;  %751 = vmatprep.subr.bf16.mxu1 %v1634_v27  ;;  %v1593_v43 = vld [vmem:[%s2322_s1 + $0x1e4] ss:$8 sps:$4 sm:$0xff]   ;;  %v1595_v44 = vld [vmem:[%s2322_s1 + $0x1e0] ss:$8 sps:$4 sm:$0xff]   ;;  %v1664_v46 = vld [vmem:[%s2322_s1 + $0x74] ss:$8 sps:$4 sm:$0xff]  }
  0x10   :  { %796 = vmatprep.subr.bf16.mxu0 %v1563_v8  ;;  %v1660_v45 = vld [vmem:[%s2322_s1 + $0x60] ss:$8 sps:$4 sm:$0xff]   ;;  %v1596_v47 = vld [vmem:[%s2322_s1 + $0x1f4] ss:$8 sps:$4 sm:$0xff]   ;;  %v1598_v48 = vld [vmem:[%s2322_s1 + $0x1f0] ss:$8 sps:$4 sm:$0xff]  }
  0x11   :  { %v1666_v49 = vld [vmem:[%s2322_s1 + $0x70] ss:$8 sps:$4 sm:$0xff]   ;;  %v1670_v50 = vld [vmem:[%s2322_s1 + $0x84] ss:$8 sps:$4 sm:$0xff]   ;;  %v1601_v52 = vld [vmem:[%s2322_s1 + $0x200] ss:$8 sps:$4 sm:$0xff]  }
  0x12   :  { %752 = vmatpush1.bf16.msra.mxu1 %v1636_v29  ;;  %v1603_v51 = vld [vmem:[%s2322_s1 + $0x204] ss:$8 sps:$4 sm:$0xff]   ;;  %v1999_v53 = vld [vmem:[%s2321_s0 + $0x10] sm:$0xff]  ;;  %v1672_v55 = vld [vmem:[%s2322_s1 + $0x80] ss:$8 sps:$4 sm:$0xff]  }
  0x13   :  { %797 = vmatpush1.bf16.msra.mxu0 %v1565_v9  ;;  %753 = vmatprep.subr.bf16.mxu1 %v1640_v30  ;;  %v1676_v56 = vld [vmem:[%s2322_s1 + $0x94] ss:$8 sps:$4 sm:$0xff]   ;;  %v1321_v58 = vcombine.high %v1999_v53, %v1999_v53  ;;  %v1604_v59 = vld [vmem:[%s2322_s1 + $0x210] ss:$8 sps:$4 sm:$0xff]   ;;  %v1684_v61 = vld [vmem:[%s2322_s1 + $0xa4] ss:$8 sps:$4 sm:$0xff]  }
  0x14   :  { %798 = vmatprep.subr.bf16.mxu0 %v1566_v10  ;;  %v1606_v57 = vld [vmem:[%s2322_s1 + $0x214] ss:$8 sps:$4 sm:$0xff]   ;;  %v1678_v60 = vld [vmem:[%s2322_s1 + $0x90] ss:$8 sps:$4 sm:$0xff]   ;;  %v1609_v62 = vld [vmem:[%s2322_s1 + $0x224] ss:$8 sps:$4 sm:$0xff]  }
  0x15   :  { %v1607_v63 = vld [vmem:[%s2322_s1 + $0x220] ss:$8 sps:$4 sm:$0xff]   ;;  %v1690_v1 = vld [vmem:[%s2322_s1 + $0xb4] ss:$8 sps:$4 sm:$0xff]   ;;  %v1692_v3 = vld [vmem:[%s2322_s1 + $0xb0] ss:$8 sps:$4 sm:$0xff]  }
  0x16   :  { %754 = vmatpush1.bf16.msra.mxu1 %v1642_v33  ;;  %v1686_v0 = vld [vmem:[%s2322_s1 + $0xa0] ss:$8 sps:$4 sm:$0xff]   ;;  %v1612_v2 = vld [vmem:[%s2322_s1 + $0x234] ss:$8 sps:$4 sm:$0xff]   ;;  %v1610_v5 = vld [vmem:[%s2322_s1 + $0x230] ss:$8 sps:$4 sm:$0xff]  }
  0x17   :  { %799 = vmatpush1.bf16.msra.mxu0 %v1568_v11  ;;  %755 = vmatprep.subr.bf16.mxu1 %v1646_v34  ;;  %v34_v4 = vld [vmem:[%s2321_s0] sm:$0xff]  ;;  %v1702_v11 = vld [vmem:[%s2322_s1 + $0xd4] ss:$8 sps:$4 sm:$0xff]   ;;  %v1616_v13 = vld [vmem:[%s2322_s1 + $0x250] ss:$8 sps:$4 sm:$0xff]  }
  0x18   :  { %800 = vmatprep.subr.bf16.mxu0 %v1569_v12  ;;  %v1696_v6 = vld [vmem:[%s2322_s1 + $0xc4] ss:$8 sps:$4 sm:$0xff]   ;;  %v1317_v7 = vcombine.high %v34_v4, %v34_v4  ;;  %v1613_v9 = vld [vmem:[%s2322_s1 + $0x240] ss:$8 sps:$4 sm:$0xff]   ;;  %v1618_v12 = vld [vmem:[%s2322_s1 + $0x254] ss:$8 sps:$4 sm:$0xff]   ;;  %v1316_v27 = vcombine.low %v34_v4, %v34_v4 }
  0x19   :  { %v1615_v8 = vld [vmem:[%s2322_s1 + $0x244] ss:$8 sps:$4 sm:$0xff]   ;;  %v1698_v10 = vld [vmem:[%s2322_s1 + $0xc0] ss:$8 sps:$4 sm:$0xff]   ;;  %v1704_v14 = vld [vmem:[%s2322_s1 + $0xd0] ss:$8 sps:$4 sm:$0xff]  }
  0x1a   :  { %756 = vmatpush1.bf16.msra.mxu1 %v1648_v37  ;;  %779 = vmatprep.mubr.bf16.mxu1 %v1317_v7  ;;  %v1716_v21 = vld [vmem:[%s2322_s1 + $0xf0] ss:$8 sps:$4 sm:$0xff]   ;;  %v1726_v23 = vld [vmem:[%s2324_s3 + $0x40] sm:$0xff]   ;;  %v1639_v29 = vld [vmem:[%s2322_s1 + $0x294] ss:$8 sps:$4 sm:$0xff]  }
  0x1b   :  { %801 = vmatpush1.bf16.msra.mxu0 %v1571_v15  ;;  %757 = vmatprep.subr.bf16.mxu1 %v1652_v38  ;;  %v1708_v15 = vld [vmem:[%s2322_s1 + $0xe4] ss:$8 sps:$4 sm:$0xff]   ;;  %v1625_v22 = vld [vmem:[%s2322_s1 + $0x270] ss:$8 sps:$4 sm:$0xff]  }
  0x1c   :  { %802 = vmatprep.subr.bf16.mxu0 %v1572_v16  ;;  %v1621_v16 = vld [vmem:[%s2322_s1 + $0x264] ss:$8 sps:$4 sm:$0xff]  }
  0x1d   :  { %v1633_v24 = vld [vmem:[%s2322_s1 + $0x284] ss:$8 sps:$4 sm:$0xff]  }
  0x1e   :  { %758 = vmatpush1.bf16.msra.mxu1 %v1654_v41  ;;  %v1729_v30 = vld [vmem:[%s2324_s3 + $0x8] sm:$0xff]  }
  0x1f   :  { %803 = vmatpush1.bf16.msra.mxu0 %v1574_v17  ;;  %759 = vmatprep.subr.bf16.mxu1 %v1658_v42  ;;  %v1619_v17 = vld [vmem:[%s2322_s1 + $0x260] ss:$8 sps:$4 sm:$0xff]  }
  0x20   :  { %804 = vmatprep.subr.bf16.mxu0 %v1575_v18  ;;  %v1627_v18 = vld [vmem:[%s2322_s1 + $0x274] ss:$8 sps:$4 sm:$0xff]  }
  0x22   :  { %760 = vmatpush1.bf16.msra.mxu1 %v1660_v45 }
  0x23   :  { %805 = vmatpush1.bf16.msra.mxu0 %v1577_v19  ;;  %761 = vmatprep.subr.bf16.mxu1 %v1664_v46  ;;  %v1710_v19 = vld [vmem:[%s2322_s1 + $0xe0] ss:$8 sps:$4 sm:$0xff]  }
  0x24   :  { %806 = vmatprep.subr.bf16.mxu0 %v1578_v20  ;;  %v1714_v20 = vld [vmem:[%s2322_s1 + $0xf4] ss:$8 sps:$4 sm:$0xff]  }
  0x26   :  { %762 = vmatpush1.bf16.msra.mxu1 %v1666_v49 }
  0x27   :  { %807 = vmatpush1.bf16.msra.mxu0 %v1580_v25  ;;  %763 = vmatprep.subr.bf16.mxu1 %v1670_v50  ;;  %v1727_v25 = vld [vmem:[%s2324_s3] sm:$0xff]  }
  0x28   :  { %808 = vmatprep.subr.bf16.mxu0 %v1581_v26  ;;  %v1631_v26 = vld [vmem:[%s2322_s1 + $0x280] ss:$8 sps:$4 sm:$0xff]  }
  0x2a   :  { %764 = vmatpush1.bf16.msra.mxu1 %v1672_v55 }
  0x2b   :  { %809 = vmatpush1.bf16.msra.mxu0 %v1583_v28  ;;  %765 = vmatprep.subr.bf16.mxu1 %v1676_v56  ;;  %v1728_v28 = vld [vmem:[%s2324_s3 + $0x48] sm:$0xff]  }
  0x2c   :  { %810 = vmatprep.subr.bf16.mxu0 %v1584_v31 }
  0x2e   :  { %766 = vmatpush1.bf16.msra.mxu1 %v1678_v60 }
  0x2f   :  { %811 = vmatpush1.bf16.msra.mxu0 %v1586_v32  ;;  %767 = vmatprep.subr.bf16.mxu1 %v1684_v61 }
  0x30   :  { %812 = vmatprep.subr.bf16.mxu0 %v1587_v35 }
  0x32   :  { %768 = vmatpush1.bf16.msra.mxu1 %v1686_v0 }
  0x33   :  { %813 = vmatpush1.bf16.msra.mxu0 %v1589_v36  ;;  %769 = vmatprep.subr.bf16.mxu1 %v1690_v1 }
  0x34   :  { %814 = vmatprep.subr.bf16.mxu0 %v1590_v39 }
  0x36   :  { %770 = vmatpush1.bf16.msra.mxu1 %v1692_v3 }
  0x37   :  { %815 = vmatpush1.bf16.msra.mxu0 %v1592_v40  ;;  %771 = vmatprep.subr.bf16.mxu1 %v1696_v6 }
  0x38   :  { %816 = vmatprep.subr.bf16.mxu0 %v1593_v43 }
  0x3a   :  { %772 = vmatpush1.bf16.msra.mxu1 %v1698_v10 }
  0x3b   :  { %817 = vmatpush1.bf16.msra.mxu0 %v1595_v44  ;;  %773 = vmatprep.subr.bf16.mxu1 %v1702_v11 }
  0x3c   :  { %818 = vmatprep.subr.bf16.mxu0 %v1596_v47 }
  0x3e   :  { %774 = vmatpush1.bf16.msra.mxu1 %v1704_v14 }
  0x3f   :  { %819 = vmatpush1.bf16.msra.mxu0 %v1598_v48  ;;  %775 = vmatprep.subr.bf16.mxu1 %v1708_v15 }
  0x40   :  { %829 = vmatprep.subr.bf16.mxu0 %v1603_v51 }
  0x42   :  { %821 = vmatmul.mubr.bf16.vlgmr.msra.gmra.mrb[0].mxu0 %v1318_v54  ;;  %776 = vmatpush1.bf16.msra.mxu1 %v1710_v19 }
  0x43   :  { %830 = vmatpush1.bf16.msra.mxu0 %v1601_v52  ;;  %861 = vmatprep.mubr.bf16.mxu0 %v1321_v58 }
  0x44   :  { %831 = vmatprep.subr.bf16.mxu0 %v1606_v57  ;;  %777 = vmatprep.subr.bf16.mxu1 %v1714_v20 }
  0x46   :  { %778 = vmatpush1.bf16.msra.mxu1 %v1716_v21 }
  0x47   :  { %832 = vmatpush1.bf16.msra.mxu0 %v1604_v59  ;;  %1467 = vmatprep.subr.bf16.mxu1 %v1726_v23 }
  0x48   :  { %833 = vmatprep.subr.bf16.mxu0 %v1609_v62 }
  0x49   :  { %780 = vmatmul.mubr.bf16.vlgmr.msra.gmra.mrb[0].mxu1 %v1316_v27 }
  0x4a   :  { %1468 = vmatpush3.bf16.msra.mxu1 %v1727_v25 }
  0x4b   :  { %834 = vmatpush1.bf16.msra.mxu0 %v1607_v63 }
  0x4c   :  { %835 = vmatprep.subr.bf16.mxu0 %v1612_v2 }
  0x4f   :  { %836 = vmatpush1.bf16.msra.mxu0 %v1610_v5 }
  0x50   :  { %837 = vmatprep.subr.bf16.mxu0 %v1615_v8 }
  0x53   :  { %838 = vmatpush1.bf16.msra.mxu0 %v1613_v9 }
  0x54   :  { %839 = vmatprep.subr.bf16.mxu0 %v1618_v12 }
  0x57   :  { %840 = vmatpush1.bf16.msra.mxu0 %v1616_v13 }
  0x58   :  { %841 = vmatprep.subr.bf16.mxu0 %v1621_v16 }
  0x5b   :  { %842 = vmatpush1.bf16.msra.mxu0 %v1619_v17 }
  0x5c   :  { %843 = vmatprep.subr.bf16.mxu0 %v1627_v18 }
  0x5f   :  { %844 = vmatpush1.bf16.msra.mxu0 %v1625_v22 }
  0x60   :  { %845 = vmatprep.subr.bf16.mxu0 %v1633_v24 }
  0x61   :  { %14 = vsyncpa [#allocation3], 0  ;;  %v1637_v31 = vld [vmem:[%s2322_s1 + $0x290] ss:$8 sps:$4 sm:$0xff]   ;;  %1469 = vmatprep.subr.bf16.mxu1 %v1728_v28  ;;  %v1645_v33 = vld [vmem:[%s2322_s1 + $0x2a4] ss:$8 sps:$4 sm:$0xff]   ;;  %v1320_v51 = vcombine.low %v1999_v53, %v1999_v53  ;;  %v152_v16 = vlaneseq }
  0x62   :  { %v1730_v32 = vld [vmem:[%s2324_s3 + $0x50] sm:$0xff]   ;;  %1470 = vmatpush3.bf16.msra.mxu1 %v1729_v30  ;;  %v1643_v35 = vld [vmem:[%s2322_s1 + $0x2a0] ss:$8 sps:$4 sm:$0xff]   ;;  %v1732_v36 = vld [vmem:[%s2324_s3 + $0x58] sm:$0xff]   ;;  %v1782_v56 = vmov 0   ;;  %v1783_v11 = vmov 0.0  }
  0x63   :  { %846 = vmatpush1.bf16.msra.mxu0 %v1631_v26  ;;  %v1731_v34 = vld [vmem:[%s2324_s3 + $0x10] sm:$0xff]   ;;  %1471 = vmatprep.subr.bf16.mxu1 %v1730_v32  ;;  %v1733_v38 = vld [vmem:[%s2324_s3 + $0x18] sm:$0xff]   ;;  %v1734_v40 = vld [vmem:[%s2324_s3 + $0x60] sm:$0xff]   ;;  %v153_v17 = vshrl.u32 %v152_v16, 7  ;;  %vm1784_vm0 = vmmov 0   ;;  %vm1244_vm1 = vcmask 523264  }
  0x64   :  { %847 = vmatprep.subr.bf16.mxu0 %v1639_v29  ;;  %v1651_v37 = vld [vmem:[%s2322_s1 + $0x2b4] ss:$8 sps:$4 sm:$0xff]   ;;  %v1649_v39 = vld [vmem:[%s2322_s1 + $0x2b0] ss:$8 sps:$4 sm:$0xff]   ;;  %v1657_v41 = vld [vmem:[%s2322_s1 + $0x2c4] ss:$8 sps:$4 sm:$0xff]  }
  0x65   :  { %v1735_v42 = vld [vmem:[%s2324_s3 + $0x20] sm:$0xff]   ;;  %v1663_v44 = vld [vmem:[%s2322_s1 + $0x2d4] ss:$8 sps:$4 sm:$0xff]   ;;  %v1661_v45 = vld [vmem:[%s2322_s1 + $0x2d0] ss:$8 sps:$4 sm:$0xff]   ;;  %v154_v18 = vsub.s32 0, %v153_v17 }
  0x66   :  { %1472 = vmatpush3.bf16.msra.mxu1 %v1731_v34  ;;  %v1655_v43 = vld [vmem:[%s2322_s1 + $0x2c0] ss:$8 sps:$4 sm:$0xff]   ;;  %v1669_v46 = vld [vmem:[%s2322_s1 + $0x2e4] ss:$8 sps:$4 sm:$0xff]   ;;  %v1675_v48 = vld [vmem:[%s2322_s1 + $0x2f4] ss:$8 sps:$4 sm:$0xff]  }
  0x67   :  { %848 = vmatpush1.bf16.msra.mxu0 %v1637_v31  ;;  %1473 = vmatprep.subr.bf16.mxu1 %v1732_v36  ;;  %v1667_v47 = vld [vmem:[%s2322_s1 + $0x2e0] ss:$8 sps:$4 sm:$0xff]   ;;  %v1673_v49 = vld [vmem:[%s2322_s1 + $0x2f0] ss:$8 sps:$4 sm:$0xff]   ;;  %v1683_v50 = vld [vmem:[%s2322_s1 + $0x304] ss:$8 sps:$4 sm:$0xff]  }
  0x68   :  { %849 = vmatprep.subr.bf16.mxu0 %v1645_v33  ;;  %v1681_v52 = vld [vmem:[%s2322_s1 + $0x300] ss:$8 sps:$4 sm:$0xff]   ;;  %v1689_v54 = vld [vmem:[%s2322_s1 + $0x314] ss:$8 sps:$4 sm:$0xff]   ;;  %v1687_v55 = vld [vmem:[%s2322_s1 + $0x310] ss:$8 sps:$4 sm:$0xff]  }
  0x69   :  { %v1695_v53 = vld [vmem:[%s2322_s1 + $0x324] ss:$8 sps:$4 sm:$0xff]   ;;  %v1693_v57 = vld [vmem:[%s2322_s1 + $0x320] ss:$8 sps:$4 sm:$0xff]   ;;  %v1701_v58 = vld [vmem:[%s2322_s1 + $0x334] ss:$8 sps:$4 sm:$0xff]  }
  0x6a   :  { %1474 = vmatpush3.bf16.msra.mxu1 %v1733_v38  ;;  %v1699_v59 = vld [vmem:[%s2322_s1 + $0x330] ss:$8 sps:$4 sm:$0xff]   ;;  %v1707_v60 = vld [vmem:[%s2322_s1 + $0x344] ss:$8 sps:$4 sm:$0xff]   ;;  %v1705_v61 = vld [vmem:[%s2322_s1 + $0x340] ss:$8 sps:$4 sm:$0xff]  }
  0x6b   :  { %850 = vmatpush1.bf16.msra.mxu0 %v1643_v35  ;;  %1475 = vmatprep.subr.bf16.mxu1 %v1734_v40  ;;  %v1713_v62 = vld [vmem:[%s2322_s1 + $0x354] ss:$8 sps:$4 sm:$0xff]   ;;  %v1711_v63 = vld [vmem:[%s2322_s1 + $0x350] ss:$8 sps:$4 sm:$0xff]   ;;  %v1719_v0 = vld [vmem:[%s2322_s1 + $0x364] ss:$8 sps:$4 sm:$0xff]  }
  0x6c   :  { %851 = vmatprep.subr.bf16.mxu0 %v1651_v37  ;;  %v1717_v1 = vld [vmem:[%s2322_s1 + $0x360] ss:$8 sps:$4 sm:$0xff]   ;;  %v1724_v2 = vld [vmem:[%s2322_s1 + $0x374] ss:$8 sps:$4 sm:$0xff]   ;;  %v1722_v3 = vld [vmem:[%s2322_s1 + $0x370] ss:$8 sps:$4 sm:$0xff]  }
  0x6d   :  { %v1725_v4 = vld [vmem:[%s2321_s0 + $0x18] ss:$0 sps:$4 sm:$0xff]   ;;  %v1736_v5 = vld [vmem:[%s2324_s3 + $0x68] sm:$0xff]   ;;  %v1738_v7 = vld [vmem:[%s2324_s3 + $0x70] sm:$0xff]   ;;  %v158_v20 = vsub.s32 1, %v153_v17  ;;  %vm1288_vm2 = vcmask 80896  }
  0x6e   :  { %1476 = vmatpush3.bf16.msra.mxu1 %v1735_v42  ;;  %v1737_v6 = vld [vmem:[%s2324_s3 + $0x28] sm:$0xff]   ;;  %v1739_v8 = vld [vmem:[%s2324_s3 + $0x30] sm:$0xff]   ;;  %v1740_v9 = vld [vmem:[%s2324_s3 + $0x78] sm:$0xff]  }
  0x6f   :  { %852 = vmatpush1.bf16.msra.mxu0 %v1649_v39  ;;  %1477 = vmatprep.subr.bf16.mxu1 %v1736_v5  ;;  %v1741_v10 = vld [vmem:[%s2324_s3 + $0x38] sm:$0xff]   ;;  %v150_v19 = vld [vmem:[%s2323_s2] sm:$0x3]  ;;  %v1743_v36 = vld [vmem:[%s2326_s5 + $0x8] sm:$0xff]  }
  0x70   :  { %853 = vmatprep.subr.bf16.mxu0 %v1657_v41  ;;  %v155_v21 = vrot.slane %v150_v19, %v154_v18  ;;  %v159_v22 = vrot.slane %v150_v19, %v158_v20  ;;  %v1742_v34 = vld [vmem:[%s2326_s5] sm:$0xff]   ;;  %v1744_v37 = vld [vmem:[%s2326_s5 + $0x10] sm:$0xff]   ;;  %v1745_v38 = vld [vmem:[%s2326_s5 + $0x18] sm:$0xff]  }
  0x71   :  { %v1746_v39 = vld [vmem:[%s2326_s5 + $0x20] sm:$0xff]   ;;  %v1747_v40 = vld [vmem:[%s2326_s5 + $0x28] sm:$0xff]   ;;  %v1748_v41 = vld [vmem:[%s2326_s5 + $0x30] sm:$0xff]  }
  0x72   :  { %1478 = vmatpush3.bf16.msra.mxu1 %v1737_v6  ;;  %v1749_v42 = vld [vmem:[%s2326_s5 + $0x38] sm:$0xff]  }
  0x73   :  { %854 = vmatpush1.bf16.msra.mxu0 %v1655_v43  ;;  %1479 = vmatprep.subr.bf16.mxu1 %v1738_v7 }
  0x74   :  { %855 = vmatprep.subr.bf16.mxu0 %v1663_v44  ;;  %v1435_v44 = vld [vmem:[%s2325_s4] ss:$0 sm:$0xff] }
  0x76   :  { %1480 = vmatpush3.bf16.msra.mxu1 %v1739_v8 }
  0x77   :  { %856 = vmatpush1.bf16.msra.mxu0 %v1661_v45  ;;  %1481 = vmatprep.subr.bf16.mxu1 %v1740_v9 }
  0x78   :  { %857 = vmatprep.subr.bf16.mxu0 %v1669_v46 }
  0x7a   :  { %1482 = vmatpush3.bf16.msra.mxu1 %v1741_v10 }
  0x7b   :  { %858 = vmatpush1.bf16.msra.mxu0 %v1667_v47  ;;  %1503 = vmatprep.subr.bf16.mxu1 %v1783_v11 }
  0x7c   :  { %859 = vmatprep.subr.bf16.mxu0 %v1675_v48 }
  0x7f   :  { %860 = vmatpush1.bf16.msra.mxu0 %v1673_v49 }
  0x80   :  { %870 = vmatprep.subr.bf16.mxu0 %v1683_v50 }
  0x82   :  { %862 = vmatmul.mubr.bf16.vlgmr.msra.gmra.mrb[0].mxu0 %v1320_v51  ;;  %v1750_v51 = vld [vmem:[%s2328_s7] sm:$0xff]  }
  0x83   :  { %871 = vmatpush1.bf16.msra.mxu0 %v1681_v52  ;;  %902 = vmatprep.mubr.bf16.mxu0 %v1782_v56  ;;  %v1753_v56 = vld [vmem:[%s2328_s7 + $0x18] sm:$0xff]  }
  0x84   :  { %872 = vmatprep.subr.bf16.mxu0 %v1689_v54  ;;  %v1751_v54 = vld [vmem:[%s2328_s7 + $0x8] sm:$0xff]  }
  0x87   :  { %873 = vmatpush1.bf16.msra.mxu0 %v1687_v55  ;;  %v1752_v55 = vld [vmem:[%s2328_s7 + $0x10] sm:$0xff]  }
  0x88   :  { %874 = vmatprep.subr.bf16.mxu0 %v1695_v53  ;;  %v1452_v53 = vld [vmem:[%s2327_s6] ss:$0 sm:$0xff]  ;;  %s1785_s6 = smov [#allocation2]  }
  0x89   :  { %s1308_s7 = sshll.u32 %s1785_s6, 4  ;;  %s1309_s7 = int_to_ptr.vmem [resolvable:$true] %s1308_s7 }
  0x8a   :  { %p1763_p1 = scmp.lt.s32.totalorder %s1309_s7, %s1309_s7 }
  0x8b   :  { %875 = vmatpush1.bf16.msra.mxu0 %v1693_v57 }
  0x8c   :  { %876 = vmatprep.subr.bf16.mxu0 %v1701_v58 }
  0x8f   :  { %877 = vmatpush1.bf16.msra.mxu0 %v1699_v59 }
  0x90   :  { %878 = vmatprep.subr.bf16.mxu0 %v1707_v60 }
  0x93   :  { %879 = vmatpush1.bf16.msra.mxu0 %v1705_v61 }
  0x94   :  { %880 = vmatprep.subr.bf16.mxu0 %v1713_v62 }
  0x97   :  { %881 = vmatpush1.bf16.msra.mxu0 %v1711_v63 }
  0x98   :  { %882 = vmatprep.subr.bf16.mxu0 %v1719_v0  ;;  %v1461_v0 = vld [vmem:[%s2329_s8] ss:$0 sm:$0xff]  ;;  %s1758_s8 = scalar_lea.vmem %s1309_s7, 128 }
  0x99   :  { %p1759_p0 = scmp.ne.s32.totalorder %s1309_s7, %s1758_s8  ;;  %p1764_p2 = scmp.lt.s32.totalorder %s1758_s8, %s1758_s8 }
  0x9b   :  { %883 = vmatpush1.bf16.msra.mxu0 %v1717_v1  ;;  %p1765_p3 = por %p1764_p2, %p1763_p1 }
  0x9c   :  { %884 = vmatprep.subr.bf16.mxu0 %v1724_v2 }
  0x9d   :  { %p1766_p4 = pnand %p1765_p3, %p1759_p0 }
  0x9f   :  { %885 = vmatpush1.bf16.msra.mxu0 %v1722_v3 }
  0xa2   :  { %903 = vmatmul.mubr.bf16.vlgmr.msra.gmra.mrb[0].mxu0 %v1725_v4 }
 0x11c   :  { %v781_v12 = vpop.f32.mrb[0].mxu1 }
 0x11d   :  { %v783_v13 = vpop.f32.mrb[1].mxu1  ;;  %v782_v23 = vadd.f32 %v781_v12, %v155_v21 }
 0x11e   :  { %v785_v14 = vpop.f32.mrb[2].mxu1  ;;  %v784_v24 = vadd.f32 %v783_v13, %v159_v22 }
 0x11f   :  { %v786_v15 = vpop.f32.mrb[3].mxu1 }
 0x175   :  { %v904_v25 = vpop.f32.mrb[0].mxu0 }
 0x176   :  { %v1536_v26 = vadd.f32 %v904_v25, %v782_v23  ;;  %v906_v27 = vpop.f32.mrb[1].mxu0 }
 0x177   :  { %v1538_v28 = vadd.f32 %v906_v27, %v784_v24  ;;  %v908_v29 = vpop.f32.mrb[2].mxu0 }
 0x178   :  { %v911_v30 = vmax.f32 %v1536_v26, 0.0  ;;  %v909_v31 = vpop.f32.mrb[3].mxu0 }
 0x179   :  { %v912_v32 = vmax.f32 %v1538_v28, 0.0 }
 0x17a   :  { %v913_v35 = vpack.c.bf16 %v911_v30, %v911_v30 }
 0x17b   :  { %v914_v33 = vpack.c.bf16 %v912_v32, %v912_v32 }
 0x17d   :  { %1082 = vmatprep.mubr.bf16.mxu1 %v914_v33 }
 0x17e   :  { %1083 = vmatmul.mubr.bf16.vlgmr.msra.gmra.mrb[4].mxu1 %v913_v35 }
 0x17f   :  { %1504 = vmatpush3.bf16.msra.mxu1 %v1742_v34  ;;  %1519 = vmatprep.mubr.msk.bf16.mxu1 %vm1784_vm0, %v1783_v11 }
 0x180   :  { %1505 = vmatprep.subr.bf16.mxu1 %v1783_v11 }
 0x183   :  { %1506 = vmatpush3.bf16.msra.mxu1 %v1743_v36 }
 0x184   :  { %1507 = vmatprep.subr.bf16.mxu1 %v1783_v11 }
 0x187   :  { %1508 = vmatpush3.bf16.msra.mxu1 %v1744_v37 }
 0x188   :  { %1509 = vmatprep.subr.bf16.mxu1 %v1783_v11 }
 0x18b   :  { %1510 = vmatpush3.bf16.msra.mxu1 %v1745_v38 }
 0x18c   :  { %1511 = vmatprep.subr.bf16.mxu1 %v1783_v11 }
 0x18f   :  { %1512 = vmatpush3.bf16.msra.mxu1 %v1746_v39 }
 0x190   :  { %1513 = vmatprep.subr.bf16.mxu1 %v1783_v11 }
 0x193   :  { %1514 = vmatpush3.bf16.msra.mxu1 %v1747_v40 }
 0x194   :  { %1515 = vmatprep.subr.bf16.mxu1 %v1783_v11 }
 0x197   :  { %1516 = vmatpush3.bf16.msra.mxu1 %v1748_v41 }
 0x198   :  { %1517 = vmatprep.subr.bf16.mxu1 %v1783_v11 }
 0x19b   :  { %1518 = vmatpush3.bf16.msra.mxu1 %v1749_v42 }
 0x19c   :  { %1523 = vmatprep.subr.bf16.mxu1 %v1783_v11 }
 0x251   :  { %v1483_v43 = vpop.f32.mrb[4].mxu1 }
 0x252   :  { %v1484_v45 = vpop.f32.mrb[5].mxu1 }
 0x253   :  { %v1485_v46 = vadd.f32 %v1484_v45, %v1483_v43  ;;  %v1486_v47 = vpop.f32.mrb[6].mxu1 }
 0x254   :  { %v1487_v48 = vpop.f32.mrb[7].mxu1 }
 0x255   :  { %v1085_v49 = vadd.f32 %v1485_v46, %v1435_v44 }
 0x257   :  { %v1090_v50 = vmax.f32 %v1085_v49, 0.0 }
 0x259   :  { %v1091_v52 = vpack.c.bf16 %v1090_v50, %v1090_v50 }
 0x25b   :  { %1520 = vmatmul.mubr.bf16.vlgmr.msra.gmra.mrb[8].mxu1 %v1091_v52 }
 0x25c   :  { %1524 = vmatpush3.bf16.msra.mxu1 %v1750_v51  ;;  %1531 = vmatprep.mubr.msk.bf16.mxu1 %vm1784_vm0, %v1783_v11 }
 0x25d   :  { %1525 = vmatprep.subr.bf16.mxu1 %v1783_v11 }
 0x260   :  { %1526 = vmatpush3.bf16.msra.mxu1 %v1751_v54 }
 0x261   :  { %1527 = vmatprep.subr.bf16.mxu1 %v1783_v11 }
 0x264   :  { %1528 = vmatpush3.bf16.msra.mxu1 %v1752_v55 }
 0x265   :  { %1529 = vmatprep.subr.bf16.mxu1 %v1783_v11 }
 0x268   :  { %1530 = vmatpush3.bf16.msra.mxu1 %v1753_v56 }
 0x32e   :  { %v1197_v57 = vpop.f32.mrb[8].mxu1 }
 0x32f   :  { %v1198_v58 = vadd.f32 %v1452_v53, %v1197_v57  ;;  %v1521_v59 = vpop.f32.mrb[9].mxu1 }
 0x330   :  { %v1200_v60 = vpop.f32.mrb[10].mxu1 }
 0x331   :  { %v1203_v61 = vmax.f32 %v1198_v58, 0.0  ;;  %v1522_v62 = vpop.f32.mrb[11].mxu1 }
 0x333   :  { %v1204_v63 = vpack.c.bf16 %v1203_v61, %v1203_v61 }
 0x335   :  { %1532 = vmatmul.mubr.msk.bf16.vlgmr.msra.gmra.mrb[12].mxu1 %vm1244_vm1, %v1204_v63 }
 0x408   :  { %v1282_v1 = vpop.f32.mrb[12].mxu1 }
 0x409   :  { %v1283_v2 = vadd.f32 %v1461_v0, %v1282_v1  ;;  %v1533_v3 = vpop.f32.mrb[13].mxu1 }
 0x40a   :  { %v1285_v4 = vpop.f32.mrb[14].mxu1 }
 0x40b   :  { %v1534_v5 = vpop.f32.mrb[15].mxu1  ;;  %v1289_v6 = vsel %vm1288_vm2, %v1283_v2, -inf }
 0x40c   :  { %1290 = vmax.xlane.f32.xlu0 %v1289_v6 }
 0x499   :  { %v1291_v7 = vpop.xlane.xlu0 %1290 }
 0x49a   :  { %v1292_v8 = vsub.f32 %v1283_v2, %v1291_v7 }
 0x49c   :  { %v1293_v9 = vmul.f32 1.442695, %v1292_v8 }
 0x49e   :  { %1754 = vpow2.f32 %v1293_v9 }
 0x4a8   :  { %v1755_v10 = vpop.eup %1754 }
 0x4a9   :  { %v1295_v11 = vsel %vm1288_vm2, %v1755_v10, 0.0 }
 0x4aa   :  { %1296 = vadd.xlane.f32.xlu0 %v1295_v11 }
 0x537   :  { %v1297_v12 = vpop.xlane.xlu0 %1296 }
 0x538   :  { %1756 = vlog2.f32 %v1297_v12 }
 0x542   :  { %v1757_v13 = vpop.eup %1756 }
 0x543   :  { %v1299_v14 = vmul.f32 0.6931472, %v1757_v13 }
 0x545   :  { %v1300_v15 = vsub.f32 %v1292_v8, %v1299_v14 }
 0x547   :  { %1301 = vst.msk [vmem:[#allocation2] sm:$0xff] %vm1288_vm2, %v1300_v15 }
 0x548   :  { %1769 = shalt.err (!%p1766_p4)
}
 0x549   :  { %s1770_s24 = scalar_lea.hbm %s2330_s9, 128 }
 0x54a   :  { %p1771_p5 = scmp.ne.s32.totalorder %s2330_s9, %s1770_s24  ;;  %p1774_p6 = scmp.lt.u32.totalorder %s1770_s24, %s2330_s9 }
 0x54c   :  { %p1776_p7 = pnand %p1774_p6, %p1771_p5 }
 0x54e   :  { %1779 = shalt.err (!%p1776_p7)
}
 0x54f   :  { %1311 = dma.vmem_to_hbm [thread:$0]  %s1309_s7, 128, %s2330_s9, [#allocation3]  }
 0x550   :  { %1780 = dma.done.wait [#allocation3], 128  }
 0x551   :  { %1781 = vsyncadd [#allocation3], 4294967168 }
 0x552   :  { %1315 = vsyncpa [#allocation3], 1 }

</bundles_post_ra>
